<compile_context>
chip_gen: v5e
topology: v5e:2x2
jax: 0.10.0
libtpu: 0.0.40
codegen_flags: <defaults>
</compile_context>

<pallas_src>
import functools

import jax
import jax.numpy as jnp
from jax import lax
from jax.experimental import pallas as pl
from jax.experimental.pallas import tpu as pltpu


def _focal_ce_partial_kernel(logits_ref, tgt_ref, out_ref, *, n_valid, tile_n):
    """Per-block partial sum of cross-entropy: sum_i [ lse(x_i) - x_i[t_i] ]."""
    i = pl.program_id(0)

    x = logits_ref[...]                                    # (TILE_N, C), input dtype
    tgt = tgt_ref[...]                                     # (TILE_N, 1) int32

    # Rows of the (possibly partial) last tile are masked out BEFORE any cross-row sum,
    # so garbage in the boundary block (no HBM padding copy) never contributes.
    row = lax.broadcasted_iota(jnp.int32, (tile_n, 1), 0) + i * tile_n
    valid = row < n_valid                                  # (TILE_N, 1) bool

    # Row max + subtract in the input dtype (bf16 VPU on v6e/v7x); keep only ONE full-tile
    # f32 temporary.  The row max cancels: lse(x) - x[t] = log(sum exp(x - m)) - (x - m)[t].
    m = jnp.max(x, axis=-1, keepdims=True)                 # (TILE_N, 1)
    xm = (x - m).astype(jnp.float32)                       # (TILE_N, C) f32

    lse_m = jnp.log(jnp.sum(jnp.exp(xm), axis=-1, keepdims=True))   # (TILE_N, 1)

    # Gather xm[i, target[i]] via a one-hot compare; the class iota is only (1, C) and
    # broadcasts against the (TILE_N, 1) targets (no (TILE_N, C) int32 temporary).
    col = lax.broadcasted_iota(jnp.int32, (1, x.shape[-1]), 1)
    picked = jnp.sum(jnp.where(col == tgt, xm, 0.0), axis=-1, keepdims=True)

    ce = jnp.where(valid, lse_m - picked, 0.0)             # (TILE_N, 1) per-row CE
    out_ref[0, 0] = jnp.sum(ce)                            # scalar partial -> SMEM


def _vmem_capacity_bytes():
    """Per-generation physical VMEM (v5e/v6e 128 MiB, v7x 64 MiB) with a safe fallback."""
    try:
        cap = int(pltpu.get_tpu_info().vmem_capacity_bytes)
        if cap > 0:
            return cap
    except Exception:
        pass
    return 64 * 1024 * 1024   # conservative fallback (v7x-sized VMEM)


def _pick_tile_n(n, c, itemsize, vmem_cap):
    """Rows per tile, sized in BYTES from the per-generation VMEM capacity (no row cap)."""
    # On-chip working set per grid step ~= 2 double-buffered logits tiles (input dtype)
    # + ~3 f32 elementwise temporaries of the same (tile_n, C) footprint + tiny targets.
    # Keep the total under ~60% of physical VMEM.
    total_budget = int(vmem_cap * 0.6)
    bytes_per_elem = 2 * itemsize + 3 * 4
    t = total_budget // max(1, c * bytes_per_elem)

    if n < 8:
        return n                                  # single block == full (small) array dim

    t = max(8, (t // 8) * 8)                      # sublane multiple of 8
    t = min(t, (n // 8) * 8)                      # never larger than N (no HBM padding)

    # Keep at least two reasonably balanced blocks so both v7x TensorCores get work.
    if pl.cdiv(n, t) <= 2 and n >= 16:
        t = max(8, pl.cdiv(n, 16) * 8)            # ~N/2, rounded up to a multiple of 8
    return int(t)


def focal_loss(logits, targets, gamma=0.0, eps=1e-07):
    """logits: (N, C) float (f32 or bf16); targets: (N,) int class indices. Scalar f32."""
    del eps  # unused in the reference forward pass (kept for signature parity)
    n, c = logits.shape
    itemsize = jnp.dtype(logits.dtype).itemsize
    vmem_cap = _vmem_capacity_bytes()
    tile_n = _pick_tile_n(n, c, itemsize, vmem_cap)
    num_blocks = pl.cdiv(n, tile_n)

    # Targets as an (N, 1) int32 column (tiny).  NOTE: no padding / HBM copy of the logits.
    tgt2d = targets.astype(jnp.int32).reshape(n, 1)

    # VMEM accounting: 2 double-buffered logits tiles + 2 tiny target tiles + ~3 f32
    # full-tile temporaries, capped well under the per-generation physical capacity.
    need = (2 * tile_n * c * itemsize + 2 * tile_n * 4
            + 3 * tile_n * c * 4 + (1 << 20))
    vmem_limit = int(min(int(vmem_cap * 0.75), max(16 << 20, need + (2 << 20))))

    # TODO(synk): for vocab-scale C, add a C (lane) grid axis with an online-LSE carry so a
    #   single (8, C) f32 row-block never has to exceed the per-generation tile budget.
    # TODO(synk): for C < 128, pack k = 128 // C rows per lane-row (segmented max/sum) to
    #   remove the (128 - C)/128 lane waste that dominates the compute-bound v7x regime.
    partials = pl.pallas_call(
        functools.partial(_focal_ce_partial_kernel, n_valid=n, tile_n=tile_n),
        out_shape=jax.ShapeDtypeStruct((num_blocks, 1), jnp.float32),
        grid=(num_blocks,),
        in_specs=[
            pl.BlockSpec((tile_n, c), lambda i: (i, 0)),
            pl.BlockSpec((tile_n, 1), lambda i: (i, 0)),
        ],
        out_specs=pl.BlockSpec((1, 1), lambda i: (i, 0),
                               memory_space=pltpu.MemorySpace.SMEM),
        compiler_params=pltpu.CompilerParams(
            dimension_semantics=("parallel",),   # independent partial sums (v7x megacore)
            vmem_limit_bytes=vmem_limit,
        ),
    )(logits, tgt2d)

    # Tiny scalar tail in plain JAX (matches the PyTorch module's semantics exactly).
    logp = jnp.sum(partials) / jnp.float32(n)              # CrossEntropyLoss (mean)
    p = jnp.exp(-logp)
    one_minus_p = jnp.maximum(1.0 - p, 0.0)                # no NaN for fractional gamma
    return jnp.power(one_minus_p, jnp.float32(gamma)) * logp


def _focal_loss_ref(logits, targets, gamma=0.0):
    # Pure-JAX reference for correctness checking (same semantics as the PyTorch module).
    logsm = jax.nn.log_softmax(logits.astype(jnp.float32), axis=-1)
    ce = -jnp.take_along_axis(logsm, targets.reshape(-1, 1), axis=-1).mean()
    p = jnp.exp(-ce)
    return jnp.power(jnp.maximum(1.0 - p, 0.0), gamma) * ce


if __name__ == "__main__":
    key = jax.random.PRNGKey(0)
    k1, k2 = jax.random.split(key)

    # Small shapes consistent with the module's forward: batch of logits over classes.
    N, C = 8, 32
    logits = jax.random.normal(k1, (N, C), dtype=jnp.float32)
    targets = jax.random.randint(k2, (N,), 0, C, dtype=jnp.int32)

    gamma = 2.0  # exercise the focal modulation (module default is 0)

    out = focal_loss(logits, targets, gamma=gamma)
    out = jax.block_until_ready(out)
    ref = _focal_loss_ref(logits, targets, gamma=gamma)
    assert jnp.allclose(out, ref, rtol=1e-5, atol=1e-6), (out, ref)

    # Also exercise the tiled multi-block path with a partial (masked) last block
    # (N not a multiple of TILE_N, no HBM padding copy).
    k3, k4 = jax.random.split(k2)
    N2, C2 = 1030, 128
    logits2 = jax.random.normal(k3, (N2, C2), dtype=jnp.float32)
    targets2 = jax.random.randint(k4, (N2,), 0, C2, dtype=jnp.int32)
    out2 = jax.block_until_ready(focal_loss(logits2, targets2, gamma=gamma))
    ref2 = _focal_loss_ref(logits2, targets2, gamma=gamma)
    assert jnp.allclose(out2, ref2, rtol=1e-5, atol=1e-6), (out2, ref2)

    print("KERNEL_OK")
</pallas_src>

<mosaic_0001>
module attributes {stable_mosaic.version = 11 : i64} {
  func.func @_focal_ce_partial_kernel(%arg0: i32, %arg1: memref<8x32xf32, #tpu.memory_space<vmem>>, %arg2: memref<8x1xi32, #tpu.memory_space<vmem>>, %arg3: memref<1x1xf32, #tpu.memory_space<smem>>) attributes {dimension_semantics = [#tpu.dimension_semantics<parallel>], iteration_bounds = array<i64: 1>, scalar_prefetch = 0 : i64, scratch_operands = 0 : i64, tpu.core_type = #tpu.core_type<tc>, window_params = [{transform_indices = @transform_0, window_bounds = array<i64: 8, 32>}, {transform_indices = @transform_1, window_bounds = array<i64: 8, 1>}, {transform_indices = @transform_2, window_bounds = array<i64: 1, 1>}]} {
    %c0 = arith.constant 0 : index
    %c0_0 = arith.constant 0 : index
    %0 = vector.load %arg1[%c0, %c0_0] : memref<8x32xf32, #tpu.memory_space<vmem>>, vector<8x32xf32>
    %c0_1 = arith.constant 0 : index
    %c0_2 = arith.constant 0 : index
    %1 = vector.load %arg2[%c0_1, %c0_2] : memref<8x1xi32, #tpu.memory_space<vmem>>, vector<8x1xi32>
    %2 = tpu.iota {dimensions = array<i32: 0>} : vector<8x1xi32>
    %c8_i32 = arith.constant 8 : i32
    %3 = arith.muli %arg0, %c8_i32 : i32
    %4 = vector.broadcast %3 : i32 to vector<8x1xi32>
    %5 = arith.addi %2, %4 : vector<8x1xi32>
    %c8_i32_3 = arith.constant 8 : i32
    %6 = vector.broadcast %c8_i32_3 : i32 to vector<8x1xi32>
    %7 = arith.cmpi slt, %5, %6 : vector<8x1xi32>
    %cst = arith.constant dense<0xFF800000> : vector<8xf32>
    %8 = vector.multi_reduction <maximumf>, %0, %cst [1] : vector<8x32xf32> to vector<8xf32>
    %9 = vector.shape_cast %8 : vector<8xf32> to vector<8x1xf32>
    %10 = vector.broadcast %9 : vector<8x1xf32> to vector<8x32xf32>
    %11 = arith.subf %0, %10 : vector<8x32xf32>
    %12 = math.exp %11 : vector<8x32xf32>
    %cst_4 = arith.constant dense<0.000000e+00> : vector<8xf32>
    %13 = vector.multi_reduction <add>, %12, %cst_4 [1] : vector<8x32xf32> to vector<8xf32>
    %14 = vector.shape_cast %13 : vector<8xf32> to vector<8x1xf32>
    %15 = math.log %14 : vector<8x1xf32>
    %16 = tpu.iota {dimensions = array<i32: 1>} : vector<1x32xi32>
    %17 = vector.broadcast %16 : vector<1x32xi32> to vector<8x32xi32>
    %18 = vector.broadcast %1 : vector<8x1xi32> to vector<8x32xi32>
    %19 = arith.cmpi eq, %17, %18 : vector<8x32xi32>
    %cst_5 = arith.constant 0.000000e+00 : f32
    %20 = vector.broadcast %cst_5 : f32 to vector<8x32xf32>
    %21 = arith.select %19, %11, %20 : vector<8x32xi1>, vector<8x32xf32>
    %cst_6 = arith.constant dense<0.000000e+00> : vector<8xf32>
    %22 = vector.multi_reduction <add>, %21, %cst_6 [1] : vector<8x32xf32> to vector<8xf32>
    %23 = vector.shape_cast %22 : vector<8xf32> to vector<8x1xf32>
    %24 = arith.subf %15, %23 : vector<8x1xf32>
    %cst_7 = arith.constant 0.000000e+00 : f32
    %25 = vector.broadcast %cst_7 : f32 to vector<8x1xf32>
    %26 = arith.select %7, %24, %25 : vector<8x1xi1>, vector<8x1xf32>
    %27 = vector.shape_cast %26 : vector<8x1xf32> to vector<1x8x1xf32>
    %cst_8 = arith.constant dense<0.000000e+00> : vector<1xf32>
    %28 = vector.multi_reduction <add>, %27, %cst_8 [1, 2] : vector<1x8x1xf32> to vector<1xf32>
    %29 = vector.shape_cast %28 : vector<1xf32> to vector<1x1x1xf32>
    %30 = vector.extract %29[0, 0, 0] : f32 from vector<1x1x1xf32>
    %c0_9 = arith.constant 0 : index
    %c0_10 = arith.constant 0 : index
    %31 = memref.load %arg3[%c0_9, %c0_10] : memref<1x1xf32, #tpu.memory_space<smem>>
    memref.store %30, %arg3[%c0_9, %c0_10] : memref<1x1xf32, #tpu.memory_space<smem>>
    return
  }
  func.func @transform_0(%arg0: i32) -> (i32, i32) {
    %c0_i32 = arith.constant 0 : i32
    %c0_i32_0 = arith.constant 0 : i32
    return %arg0, %c0_i32 : i32, i32
  }
  func.func @transform_1(%arg0: i32) -> (i32, i32) {
    %c0_i32 = arith.constant 0 : i32
    %c0_i32_0 = arith.constant 0 : i32
    return %arg0, %c0_i32 : i32, i32
  }
  func.func @transform_2(%arg0: i32) -> (i32, i32) {
    %c0_i32 = arith.constant 0 : i32
    %c0_i32_0 = arith.constant 0 : i32
    return %arg0, %c0_i32 : i32, i32
  }
}

</mosaic_0001>

<bundles_post_ra>
// kernel: tpu_custom_call.1
= control target key start
LH: loop header
LB: loop body
LE: loop exit
PB: predicated region body
PF: predicated region fallthrough
CT: control target
= control target key end

     0   :  { %vm20_vm0 = vcmask 261120   ;;  %s124_s0 = inlined_call_operand.vmem [shape: f32[8,32], index: 0, kind: input, shape index: {}]   ;;  %s125_s1 = inlined_call_operand.vmem [shape: s32[8,1], index: 1, kind: input, shape index: {}]   ;;  %s126_s2 = inlined_call_operand.hbm [shape: f32[1,1], index: 2, kind: output, shape index: {}]  }
   0x1   :  { %v12_v0 = vld [vmem:[%s124_s0] sm:$0xff] }
   0x2   :  { %7 = vsyncpa [#allocation3], 0  ;;  %v21_v1 = vsel %vm20_vm0, %v12_v0, -inf  ;;  %v95_v2 = vmov 0   ;;  %v13_v3 = vld [vmem:[%s125_s1] sm:$0xff]  ;;  %v32_v9 = vlaneseq  ;;  %vm44_vm2 = vcmask 7168  }
   0x3   :  { %76 = vset.pattern.permute.xlu0 %v95_v2  ;;  %s62_s13 = sshll.u32 %s126_s2, 4  ;;  %s96_s15 = smov [#allocation2]   ;;  %s63_s13 = int_to_ptr.hbm [resolvable:$true] %s62_s13 }
   0x4   :  { %22 = vmax.xlane.f32.xlu0 %v21_v1  ;;  %v33_v10 = vand.u32 127, %v32_v9 }
  0x18   :  { %35 = vperm.xlu0 %76, %v13_v3  }
  0x77   :  { %v23_v4 = vpop.xlane.xlu0 %22 }
  0x78   :  { %v24_v5 = vsub.f32 %v12_v0, %v23_v4 }
  0x7a   :  { %v25_v6 = vmul.f32 1.442695, %v24_v5 }
  0x7c   :  { %77 = vpow2.f32 %v25_v6 }
  0x82   :  { %v78_v7 = vpop.eup %77 }
  0x83   :  { %v27_v8 = vsel %vm20_vm0, %v78_v7, 0.0 }
  0x84   :  { %28 = vadd.xlane.f32.xlu1 %v27_v8 }
  0x8a   :  { %v36_v11 = vpop.permute.xlu0 %35 }
  0x8b   :  { %vm37_vm1 = vcmp.eq.s32.totalorder %v33_v10, %v36_v11 }
  0x8c   :  { %v38_v12 = vsel %vm37_vm1, %v24_v5, 0.0 }
  0x8d   :  { %v39_v13 = vsel %vm20_vm0, %v38_v12, 0.0 }
  0x8e   :  { %40 = vadd.xlane.f32.xlu1 %v39_v13 }
  0xf7   :  { %v29_v14 = vpop.xlane.xlu1 %28 }
  0xf8   :  { %79 = vlog2.f32 %v29_v14 }
  0xfe   :  { %v80_v15 = vpop.eup %79 }
  0xff   :  { %v31_v16 = vmul.f32 0.6931472, %v80_v15 }
 0x101   :  { %v41_v17 = vpop.xlane.xlu1 %40 }
 0x102   :  { %v42_v18 = vsub.f32 %v31_v16, %v41_v17 }
 0x104   :  { %v45_v19 = vsel %vm44_vm2, %v42_v18, 0.0 }
 0x105   :  { %46 = vadd.xlane.f32.xlu2 %v45_v19 }
 0x178   :  { %v47_v20 = vpop.xlane.xlu2 %46 }
 0x179   :  { %v48_v21 = vrot.slane %v47_v20, 4 }
 0x17b   :  { %v49_v22 = vadd.f32 %v48_v21, %v47_v20 }
 0x17d   :  { %v50_v23 = vrot.slane %v49_v22, 2 }
 0x17f   :  { %v51_v24 = vadd.f32 %v50_v23, %v49_v22 }
 0x181   :  { %v52_v25 = vrot.slane %v51_v24, 1 }
 0x183   :  { %v53_v26 = vadd.f32 %v52_v25, %v51_v24 }
 0x185   :  { %72 = vpush %v53_v26 }
 0x1b6   :  { %s73_s14 = spop %72 }
 0x1b7   :  { %56 = sst [smem:[#allocation2]] %s73_s14 }
 0x1b8   :  { %65 = dma.smem_to_hbm %s96_s15, 16, %s63_s13, [#allocation3]  }
 0x1b9   :  { %93 = dma.done.wait [#allocation3], 16  }
 0x1ba   :  { %94 = vsyncadd [#allocation3], 4294967280 }
 0x1bb   :  { %70 = sfence }
 0x1bc   :  { %71 = vsyncpa [#allocation3], 1 }

</bundles_post_ra>
